<compile_context>
chip_gen: v6e
topology: v6e:2x2x1
jax: 0.10.0
libtpu: 0.0.40
codegen_flags: <defaults>
</compile_context>

<pallas_src>
import numpy as np
import jax
import jax.numpy as jnp
from jax.experimental import pallas as pl
from jax.experimental.pallas import tpu as pltpu

LANE = 128
_MAX_TILE_HW = 1024  # lanes per spatial tile; C*1024*4B blocks stay well under scoped VMEM


def _scse_gate_kernel(x_ref, gate_ref, wcg_ref, bcg_ref, o_ref):
    """Fused SCSE gating on one [C, thw] tile of one sample.

    x_ref    : [1, C, thw]  activations (NCHW flattened over H*W)
    gate_ref : [1, C, 1]    channel-gate logits (linear_2 output) for this sample
    wcg_ref  : [C, 1]       1x1-conv weight of ChannelGate2d
    bcg_ref  : [1, 1]       1x1-conv bias
    o_ref    : [1, C, thw]  output tile
    """
    x = x_ref[0]                                                 # [C, thw]
    ch_gate = jax.nn.sigmoid(gate_ref[0])                        # [C, 1]   lane-broadcast
    att = jnp.sum(x * wcg_ref[...], axis=0, keepdims=True) + bcg_ref[...]  # [1, thw]
    sp_gate = jax.nn.sigmoid(att)                                # [1, thw] sublane-broadcast
    o_ref[0] = x * (ch_gate + sp_gate)                           # x*sig(g) + x*sig(att)


def _pick_spatial_tiling(hw):
    hw_p = pl.cdiv(hw, LANE) * LANE
    if hw_p <= _MAX_TILE_HW:
        return hw_p, hw_p
    hw_p = pl.cdiv(hw, _MAX_TILE_HW) * _MAX_TILE_HW
    return hw_p, _MAX_TILE_HW


@jax.jit
def scse_forward(params, x):
    """SCSE forward.  x: [N, C, H, W] float32 (NCHW, PyTorch convention)."""
    N, C, H, W = x.shape
    HW = H * W

    # ---- SpatialGate2d squeeze path (tiny; plain JAX per perf review) ------
    pooled = jnp.mean(x, axis=(2, 3))                                   # [N, C]
    h = jax.nn.relu(pooled @ params["w1"] + params["b1"])               # [N, C//16]
    gate_logits = h @ params["w2"] + params["b2"]                       # [N, C]

    # ---- fused gating kernel (reads x once, writes the result once) -------
    hw_p, thw = _pick_spatial_tiling(HW)
    x3 = x.reshape(N, C, HW)
    if hw_p != HW:
        x3 = jnp.pad(x3, ((0, 0), (0, 0), (0, hw_p - HW)))

    out = pl.pallas_call(
        _scse_gate_kernel,
        out_shape=jax.ShapeDtypeStruct((N, C, hw_p), jnp.float32),
        grid_spec=pltpu.PrefetchScalarGridSpec(
            num_scalar_prefetch=0,
            grid=(N, hw_p // thw),
            in_specs=[
                pl.BlockSpec((1, C, thw), lambda n, t: (n, 0, t)),
                pl.BlockSpec((1, C, 1), lambda n, t: (n, 0, 0)),
                pl.BlockSpec((C, 1), lambda n, t: (0, 0)),
                pl.BlockSpec((1, 1), lambda n, t: (0, 0)),
            ],
            out_specs=pl.BlockSpec((1, C, thw), lambda n, t: (n, 0, t))),
        compiler_params=pltpu.CompilerParams(
            dimension_semantics=("parallel", "parallel")),
    )(x3,
      gate_logits.reshape(N, C, 1),
      params["wcg"].reshape(C, 1),
      params["bcg"].reshape(1, 1))

    return out[:, :, :HW].reshape(N, C, H, W)


def scse_reference(params, x):
    """Pure-JAX reference mirroring the PyTorch module."""
    pooled = jnp.mean(x, axis=(2, 3))
    h = jax.nn.relu(pooled @ params["w1"] + params["b1"])
    g = h @ params["w2"] + params["b2"]
    ch_gate = jax.nn.sigmoid(g)[:, :, None, None]
    att = jnp.einsum("nchw,c->nhw", x, params["wcg"]) + params["bcg"]
    sp_gate = jax.nn.sigmoid(att)[:, None, :, :]
    return x * ch_gate + x * sp_gate


def build_params(key, c, r=16):
    cr = c // r
    k = jax.random.split(key, 6)
    # nn.Linear stores [out, in]; we store the [in, out] transpose so the
    # forward is `pooled @ w + b` (identical math, deterministic synthetic init).
    return {
        "w1": jax.random.normal(k[0], (c, cr), jnp.float32) / np.sqrt(c),
        "b1": jax.random.normal(k[1], (cr,), jnp.float32) * 0.01,
        "w2": jax.random.normal(k[2], (cr, c), jnp.float32) / np.sqrt(cr),
        "b2": jax.random.normal(k[3], (c,), jnp.float32) * 0.01,
        "wcg": jax.random.normal(k[4], (c,), jnp.float32) / np.sqrt(c),   # Conv2d(C,1,1) weight
        "bcg": jax.random.normal(k[5], (), jnp.float32) * 0.01,           # Conv2d bias
    }


if __name__ == "__main__":
    key = jax.random.PRNGKey(0)
    kx, kp = jax.random.split(key)
    N, C, H, W = 2, 64, 16, 16          # SCSE needs C >= r=16 for the squeeze FC
    x = jax.random.normal(kx, (N, C, H, W), jnp.float32)
    params = build_params(kp, C)

    y = scse_forward(params, x)
    jax.block_until_ready(y)

    y_ref = scse_reference(params, x)
    assert y.shape == (N, C, H, W), y.shape
    assert bool(jnp.all(jnp.isfinite(y)))
    np.testing.assert_allclose(np.asarray(y), np.asarray(y_ref), rtol=1e-5, atol=1e-5)
    print("KERNEL_OK")
</pallas_src>

<mosaic_0001>
module attributes {stable_mosaic.version = 11 : i64} {
  func.func @_scse_gate_kernel(%arg0: i32, %arg1: i32, %arg2: memref<1x64x256xf32, #tpu.memory_space<vmem>>, %arg3: memref<1x64x1xf32, #tpu.memory_space<vmem>>, %arg4: memref<64x1xf32, #tpu.memory_space<vmem>>, %arg5: memref<1x1xf32, #tpu.memory_space<vmem>>, %arg6: memref<1x64x256xf32, #tpu.memory_space<vmem>>) attributes {dimension_semantics = [#tpu.dimension_semantics<parallel>, #tpu.dimension_semantics<parallel>], iteration_bounds = array<i64: 2, 1>, scalar_prefetch = 0 : i64, scratch_operands = 0 : i64, tpu.core_type = #tpu.core_type<tc>, window_params = [{transform_indices = @transform_0, window_bounds = array<i64: 1, 64, 256>}, {transform_indices = @transform_1, window_bounds = array<i64: 1, 64, 1>}, {pipeline_mode = #tpu.pipeline_mode<synchronous>, transform_indices = @transform_2, window_bounds = array<i64: 64, 1>}, {pipeline_mode = #tpu.pipeline_mode<synchronous>, transform_indices = @transform_3, window_bounds = array<i64: 1, 1>}, {transform_indices = @transform_4, window_bounds = array<i64: 1, 64, 256>}]} {
    %c0 = arith.constant 0 : index
    %c0_0 = arith.constant 0 : index
    %c0_1 = arith.constant 0 : index
    %0 = vector.load %arg2[%c0, %c0_0, %c0_1] : memref<1x64x256xf32, #tpu.memory_space<vmem>>, vector<1x64x256xf32>
    %1 = vector.shape_cast %0 : vector<1x64x256xf32> to vector<64x256xf32>
    %c0_2 = arith.constant 0 : index
    %c0_3 = arith.constant 0 : index
    %c0_4 = arith.constant 0 : index
    %2 = vector.load %arg3[%c0_2, %c0_3, %c0_4] : memref<1x64x1xf32, #tpu.memory_space<vmem>>, vector<1x64x1xf32>
    %3 = vector.shape_cast %2 : vector<1x64x1xf32> to vector<64x1xf32>
    %4 = arith.negf %3 : vector<64x1xf32>
    %5 = math.exp %4 : vector<64x1xf32>
    %cst = arith.constant 1.000000e+00 : f32
    %6 = vector.broadcast %cst : f32 to vector<64x1xf32>
    %7 = arith.addf %6, %5 : vector<64x1xf32>
    %8 = arith.divf %6, %7 : vector<64x1xf32>
    %c0_5 = arith.constant 0 : index
    %c0_6 = arith.constant 0 : index
    %9 = vector.load %arg4[%c0_5, %c0_6] : memref<64x1xf32, #tpu.memory_space<vmem>>, vector<64x1xf32>
    %10 = vector.broadcast %9 : vector<64x1xf32> to vector<64x256xf32>
    %11 = arith.mulf %1, %10 : vector<64x256xf32>
    %cst_7 = arith.constant dense<0.000000e+00> : vector<256xf32>
    %12 = vector.multi_reduction <add>, %11, %cst_7 [0] : vector<64x256xf32> to vector<256xf32>
    %13 = vector.shape_cast %12 : vector<256xf32> to vector<1x256xf32>
    %c0_8 = arith.constant 0 : index
    %c0_9 = arith.constant 0 : index
    %14 = vector.load %arg5[%c0_8, %c0_9] : memref<1x1xf32, #tpu.memory_space<vmem>>, vector<1x1xf32>
    %15 = vector.broadcast %14 : vector<1x1xf32> to vector<1x256xf32>
    %16 = arith.addf %13, %15 : vector<1x256xf32>
    %17 = arith.negf %16 : vector<1x256xf32>
    %18 = math.exp %17 : vector<1x256xf32>
    %cst_10 = arith.constant 1.000000e+00 : f32
    %19 = vector.broadcast %cst_10 : f32 to vector<1x256xf32>
    %20 = arith.addf %19, %18 : vector<1x256xf32>
    %21 = arith.divf %19, %20 : vector<1x256xf32>
    %22 = vector.broadcast %8 : vector<64x1xf32> to vector<64x256xf32>
    %23 = vector.broadcast %21 : vector<1x256xf32> to vector<64x256xf32>
    %24 = arith.addf %22, %23 : vector<64x256xf32>
    %25 = arith.mulf %1, %24 : vector<64x256xf32>
    %c0_11 = arith.constant 0 : index
    %c0_12 = arith.constant 0 : index
    %c0_13 = arith.constant 0 : index
    %26 = vector.load %arg6[%c0_11, %c0_12, %c0_13] : memref<1x64x256xf32, #tpu.memory_space<vmem>>, vector<1x64x256xf32>
    %27 = vector.shape_cast %26 : vector<1x64x256xf32> to vector<64x256xf32>
    %28 = vector.shape_cast %25 : vector<64x256xf32> to vector<1x64x256xf32>
    tpu.vector_store %arg6[%c0_11, %c0_12, %c0_13], %28 {strides = array<i32>} : memref<1x64x256xf32, #tpu.memory_space<vmem>>, vector<1x64x256xf32>,
    return
  }
  func.func @transform_0(%arg0: i32, %arg1: i32) -> (i32, i32, i32) {
    %c0_i32 = arith.constant 0 : i32
    %c0_i32_0 = arith.constant 0 : i32
    return %arg0, %c0_i32, %arg1 : i32, i32, i32
  }
  func.func @transform_1(%arg0: i32, %arg1: i32) -> (i32, i32, i32) {
    %c0_i32 = arith.constant 0 : i32
    %c0_i32_0 = arith.constant 0 : i32
    %c0_i32_1 = arith.constant 0 : i32
    return %arg0, %c0_i32, %c0_i32_0 : i32, i32, i32
  }
  func.func @transform_2(%arg0: i32, %arg1: i32) -> (i32, i32) {
    %c0_i32 = arith.constant 0 : i32
    %c0_i32_0 = arith.constant 0 : i32
    %c0_i32_1 = arith.constant 0 : i32
    return %c0_i32, %c0_i32_0 : i32, i32
  }
  func.func @transform_3(%arg0: i32, %arg1: i32) -> (i32, i32) {
    %c0_i32 = arith.constant 0 : i32
    %c0_i32_0 = arith.constant 0 : i32
    %c0_i32_1 = arith.constant 0 : i32
    return %c0_i32, %c0_i32_0 : i32, i32
  }
  func.func @transform_4(%arg0: i32, %arg1: i32) -> (i32, i32, i32) {
    %c0_i32 = arith.constant 0 : i32
    %c0_i32_0 = arith.constant 0 : i32
    return %arg0, %c0_i32, %arg1 : i32, i32, i32
  }
}

</mosaic_0001>

<bundles_post_ra>
// kernel: scse_forward.1
= control target key start
LH: loop header
LB: loop body
LE: loop exit
PB: predicated region body
PF: predicated region fallthrough
CT: control target
= control target key end

     0   :  { %s778_s17 = smov 0   ;;  %s780_s18 = smov 0   ;;  %s946_s0 = inlined_call_operand.vmem [shape: f32[2,64,256], index: 0, kind: input, shape index: {}]   ;;  %s947_s1 = inlined_call_operand.vmem [shape: f32[2,64,1], index: 1, kind: input, shape index: {}]   ;;  %s948_s2 = inlined_call_operand.vmem [shape: f32[64,1], index: 2, kind: input, shape index: {}]   ;;  %s949_s3 = inlined_call_operand.<no memory space> [shape: f32[1,1], index: 3, kind: input, shape index: {}]   ;;  %s950_s4 = inlined_call_operand.vmem [shape: f32[2,64,256], index: 4, kind: output, shape index: {}]  }
   0x1   :  { %v9_v0 = vstv %s949_s3  ;;  %s782_s19 = smov 0  }
   0x2   :  { %10 = vst [vmem:[#allocation2] sm:$0x1] %v9_v0 }
   0x3 LB: > { %s28_s3 = sadd.s32 1, %s743_s18  ;;  %p636_p0 = scmp.ge.s32.totalorder %s747_s19, 1  ;;  %s747_s19 = sphi %s782_s19, %s16_s19   ;;  %s743_s18 = sphi %s780_s18, %s952_s18   ;;  %s739_s17 = sphi %s778_s17, %s951_s17  }
   0x4   : > { %p30_p1 = scmp.ge.s32.totalorder %s28_s3, 2  ;;  %p195_p2 = scmp.lt.s32.totalorder %s747_s19, 3 }
   0x6   : > { %s954_s3 = smov (%p30_p1, %s28_s3), 0  ;;  %p196_p3 = pnand %p636_p0, %p195_p2 }
   0x7   : > { %p235_p4 = scmp.lt.s32.totalorder (!%p196_p3), %s739_s17, 1 }
   0x8   : > { %199 = sbr.rel (%p196_p3) target bundleno = 218 (0xda), region = 36 }
   0xd   : > { %v333_v1 = vld [vmem:[%s948_s2 + $0x10] sm:$0xff]  ;;  %v331_v2 = vld [vmem:[%s948_s2] sm:$0xff]  ;;  %v749_v3 = vmov 0   ;;  %s956_s17 = smov (!%p235_p4, %s739_s17), 1  ;;  %v334_v4 = vld [vmem:[%s948_s2 + $0x18] sm:$0xff] }
   0xe   : > { %684 = vset.pattern.permute.xlu1 %v749_v3  ;;  %683 = vset.pattern.permute.xlu0 %v749_v3  ;;  %v332_v5 = vld [vmem:[%s948_s2 + $0x8] sm:$0xff]  ;;  %s656_s28 = sshll.u32 %s956_s17, 6  ;;  %v335_v7 = vld [vmem:[%s948_s2 + $0x20] sm:$0xff]  ;;  %v338_v22 = vld [vmem:[%s948_s2 + $0x38] sm:$0xff]  ;;  %s655_s14 = sshll.u32 %s956_s17, 7 }
   0xf   : > { %351 = vperm.xlu1 %684, %v333_v1   ;;  %341 = vperm.xlu0 %683, %v331_v2   ;;  %v336_v6 = vld [vmem:[%s948_s2 + $0x28] sm:$0xff]  ;;  %s248_s9 = scalar_lea.vmem %s947_s1, %s656_s28  ;;  %v337_v23 = vld [vmem:[%s948_s2 + $0x30] sm:$0xff]  ;;  %v421_v26 = vld [vmem:[#allocation2] sm:$0x1]  ;;  %s832_s20 = scalar_lea.vmem %s946_s0, %s655_s14 }
  0x10   : > { %v276_v8 = vld [vmem:[%s248_s9 + $0x8] sm:$0xff]  ;;  %v275_v9 = vld [vmem:[%s248_s9] sm:$0xff]  ;;  %v278_v10 = vld [vmem:[%s248_s9 + $0x18] sm:$0xff]  ;;  %s903_s23 = scalar_lea.vmem %s950_s4, %s655_s14 }
  0x11   : > { %v644_v11 = vmul.f32 -1.442695, %v276_v8  ;;  %v643_v12 = vmul.f32 -1.442695, %v275_v9  ;;  %v646_v13 = vmul.f32 -1.442695, %v278_v10 }
  0x12   : > { %v277_v14 = vld [vmem:[%s248_s9 + $0x10] sm:$0xff]  ;;  %v280_v15 = vld [vmem:[%s248_s9 + $0x28] sm:$0xff]  ;;  %v279_v16 = vld [vmem:[%s248_s9 + $0x20] sm:$0xff] }
  0x13   : > { %356 = vperm.xlu1 %684, %v334_v4   ;;  %346 = vperm.xlu0 %683, %v332_v5   ;;  %685 = vpow2.f32 %v644_v11  ;;  %v645_v17 = vmul.f32 -1.442695, %v277_v14  ;;  %v648_v18 = vmul.f32 -1.442695, %v280_v15  ;;  %v647_v19 = vmul.f32 -1.442695, %v279_v16 }
  0x14   : > { %687 = vpow2.f32 %v643_v12  ;;  %v282_v20 = vld [vmem:[%s248_s9 + $0x38] sm:$0xff]  ;;  %v281_v21 = vld [vmem:[%s248_s9 + $0x30] sm:$0xff]  ;;  %v835_v53 = vld [vmem:[%s832_s20] sm:$0xff] }
  0x15   : > { %689 = vpow2.f32 %v646_v13  ;;  %v650_v24 = vmul.f32 -1.442695, %v282_v20  ;;  %v649_v25 = vmul.f32 -1.442695, %v281_v21  ;;  %v838_v54 = vld [vmem:[%s832_s20 + $0x8] sm:$0xff]  ;;  %v841_v55 = vld [vmem:[%s832_s20 + $0x10] sm:$0xff] }
  0x16   : > { %691 = vpow2.f32 %v645_v17  ;;  %v844_v56 = vld [vmem:[%s832_s20 + $0x18] sm:$0xff]  ;;  %v847_v57 = vld [vmem:[%s832_s20 + $0x20] sm:$0xff]  ;;  %v850_v58 = vld [vmem:[%s832_s20 + $0x28] sm:$0xff] }
  0x17   : > { %366 = vperm.xlu1 %684, %v336_v6   ;;  %361 = vperm.xlu0 %683, %v335_v7   ;;  %693 = vpow2.f32 %v648_v18  ;;  %v857_v1 = vld [vmem:[%s832_s20 + $0x30] sm:$0xff]  ;;  %v860_v2 = vld [vmem:[%s832_s20 + $0x38] sm:$0xff]  ;;  %v865_v9 = vld [vmem:[%s832_s20 + $0x40] sm:$0xff] }
  0x18   : > { %695 = vpow2.f32 %v647_v19  ;;  %v868_v10 = vld [vmem:[%s832_s20 + $0x48] sm:$0xff]  ;;  %v873_v15 = vld [vmem:[%s832_s20 + $0x50] sm:$0xff]  ;;  %v876_v16 = vld [vmem:[%s832_s20 + $0x58] sm:$0xff] }
  0x19   : > { %697 = vpow2.f32 %v650_v24 }
  0x1a   : > { %699 = vpow2.f32 %v649_v25 }
  0x1b   : > { %376 = vperm.xlu1 %684, %v338_v22   ;;  %371 = vperm.xlu0 %683, %v337_v23   ;;  %v881_v22 = vld [vmem:[%s832_s20 + $0x60] sm:$0xff]  ;;  %v884_v23 = vld [vmem:[%s832_s20 + $0x68] sm:$0xff] }
  0x1f   : > { %424 = vperm.xlu0 %683, %v421_v26  }
  0x20   : > { %v686_v27 = vpop.eup %685 }
  0x21   : > { %v688_v28 = vpop.eup %687  ;;  %v308_v29 = vadd.f32 1.0, %v686_v27 }
  0x22   : > { %v690_v30 = vpop.eup %689  ;;  %v307_v31 = vadd.f32 1.0, %v688_v28 }
  0x23   : > { %v692_v32 = vpop.eup %691  ;;  %701 = vrcp.f32 %v308_v29  ;;  %v310_v33 = vadd.f32 1.0, %v690_v30  ;;  %v889_v29 = vld [vmem:[%s832_s20 + $0x70] sm:$0xff]  ;;  %v892_v30 = vld [vmem:[%s832_s20 + $0x78] sm:$0xff] }
  0x24   : > { %v694_v34 = vpop.eup %693  ;;  %703 = vrcp.f32 %v307_v31  ;;  %v309_v35 = vadd.f32 1.0, %v692_v32 }
  0x25   : > { %v696_v36 = vpop.eup %695  ;;  %705 = vrcp.f32 %v310_v33  ;;  %v312_v37 = vadd.f32 1.0, %v694_v34 }
  0x26   : > { %v698_v38 = vpop.eup %697  ;;  %707 = vrcp.f32 %v309_v35  ;;  %v311_v39 = vadd.f32 1.0, %v696_v36 }
  0x27   : > { %v700_v40 = vpop.eup %699  ;;  %709 = vrcp.f32 %v312_v37  ;;  %v314_v41 = vadd.f32 1.0, %v698_v38 }
  0x28   : > { %711 = vrcp.f32 %v311_v39  ;;  %v313_v42 = vadd.f32 1.0, %v700_v40 }
  0x29   : > { %713 = vrcp.f32 %v314_v41  ;;  %v427_v41 = vlaneseq }
  0x2a   : > { %715 = vrcp.f32 %v313_v42 }
  0x30   : > { %v702_v43 = vpop.eup %701 }
  0x31   : > { %v704_v44 = vpop.eup %703  ;;  %452 = vperm.xlu0 %683, %v702_v43  }
  0x32   : > { %v706_v45 = vpop.eup %705  ;;  %447 = vperm.xlu1 %684, %v704_v44  }
  0x33   : > { %v708_v46 = vpop.eup %707 }
  0x34   : > { %v710_v47 = vpop.eup %709 }
  0x35   : > { %462 = vperm.xlu0 %683, %v706_v45   ;;  %v712_v48 = vpop.eup %711 }
  0x36   : > { %457 = vperm.xlu1 %684, %v708_v46   ;;  %v714_v49 = vpop.eup %713  ;;  %v428_v46 = vshrl.u32 %v427_v41, 7 }
  0x37   : > { %v716_v50 = vpop.eup %715 }
  0x39   : > { %472 = vperm.xlu0 %683, %v710_v47  }
  0x3a   : > { %467 = vperm.xlu1 %684, %v712_v48  }
  0x3d   : > { %482 = vperm.xlu0 %683, %v714_v49   ;;  %v429_v49 = vsub.s32 0, %v428_v46 }
  0x3e   : > { %477 = vperm.xlu1 %684, %v716_v50  }
  0x8a   : > { %v352_v51 = vpop.permute.xlu1 %351  ;;  %v342_v52 = vpop.permute.xlu0 %341 }
  0x8b   : > { %v379_v61 = vmul.f32 %v342_v52, %v835_v53  ;;  %v380_v62 = vmul.f32 %v342_v52, %v838_v54  ;;  %v383_v3 = vmul.f32 %v352_v51, %v847_v57  ;;  %v384_v4 = vmul.f32 %v352_v51, %v850_v58 }
  0x8e   : > { %v357_v59 = vpop.permute.xlu1 %356  ;;  %v347_v60 = vpop.permute.xlu0 %346 }
  0x8f   : > { %v381_v63 = vmul.f32 %v347_v60, %v841_v55  ;;  %v382_v0 = vmul.f32 %v347_v60, %v844_v56  ;;  %v385_v11 = vmul.f32 %v357_v59, %v857_v1  ;;  %v386_v12 = vmul.f32 %v357_v59, %v860_v2 }
  0x91   : > { %v395_v5 = vadd.f32 %v381_v63, %v379_v61  ;;  %v408_v6 = vadd.f32 %v382_v0, %v380_v62 }
  0x92   : > { %v367_v7 = vpop.permute.xlu1 %366  ;;  %v362_v8 = vpop.permute.xlu0 %361 }
  0x93   : > { %v396_v13 = vadd.f32 %v395_v5, %v383_v3  ;;  %v409_v14 = vadd.f32 %v408_v6, %v384_v4  ;;  %v387_v17 = vmul.f32 %v362_v8, %v865_v9  ;;  %v388_v18 = vmul.f32 %v362_v8, %v868_v10 }
  0x94   : > { %v389_v24 = vmul.f32 %v367_v7, %v873_v15  ;;  %v390_v25 = vmul.f32 %v367_v7, %v876_v16 }
  0x95   : > { %v397_v19 = vadd.f32 %v396_v13, %v385_v11  ;;  %v410_v20 = vadd.f32 %v409_v14, %v386_v12 }
  0x96   : > { %v372_v21 = vpop.permute.xlu0 %371  ;;  %v377_v28 = vpop.permute.xlu1 %376 }
  0x97   : > { %v398_v26 = vadd.f32 %v397_v19, %v387_v17  ;;  %v411_v27 = vadd.f32 %v410_v20, %v388_v18  ;;  %v391_v31 = vmul.f32 %v372_v21, %v881_v22  ;;  %v392_v32 = vmul.f32 %v372_v21, %v884_v23 }
  0x98   : > { %v393_v35 = vmul.f32 %v377_v28, %v889_v29  ;;  %v394_v36 = vmul.f32 %v377_v28, %v892_v30 }
  0x99   : > { %v399_v33 = vadd.f32 %v398_v26, %v389_v24  ;;  %v412_v34 = vadd.f32 %v411_v27, %v390_v25 }
  0x9a   : > { %v425_v52 = vpop.permute.xlu0 %424 }
  0x9b   : > { %v400_v37 = vadd.f32 %v399_v33, %v391_v31  ;;  %v413_v38 = vadd.f32 %v412_v34, %v392_v32  ;;  %v430_v63 = vrot.slane %v425_v52, %v429_v49 }
  0x9d   : > { %v401_v39 = vadd.f32 %v400_v37, %v393_v35  ;;  %v414_v40 = vadd.f32 %v413_v38, %v394_v36 }
  0x9f   : > { %v402_v42 = vrot.slane %v401_v39, 4  ;;  %v415_v43 = vrot.slane %v414_v40, 4 }
  0xa1   : > { %v403_v44 = vadd.f32 %v402_v42, %v401_v39  ;;  %v416_v45 = vadd.f32 %v415_v43, %v414_v40 }
  0xa3   : > { %v404_v47 = vrot.slane %v403_v44, 2  ;;  %v417_v48 = vrot.slane %v416_v45, 2 }
  0xa5   : > { %v405_v50 = vadd.f32 %v404_v47, %v403_v44  ;;  %v418_v51 = vadd.f32 %v417_v48, %v416_v45 }
  0xa7   : > { %v406_v59 = vrot.slane %v405_v50, 1  ;;  %v419_v60 = vrot.slane %v418_v51, 1 }
  0xa9   : > { %v407_v61 = vadd.f32 %v406_v59, %v405_v50  ;;  %v420_v62 = vadd.f32 %v419_v60, %v418_v51 }
  0xab   : > { %v431_v0 = vadd.f32 %v430_v63, %v407_v61  ;;  %v432_v3 = vadd.f32 %v430_v63, %v420_v62 }
  0xac   : > { %v453_v12 = vpop.permute.xlu0 %452 }
  0xad   : > { %v651_v4 = vmul.f32 -1.442695, %v431_v0  ;;  %v652_v5 = vmul.f32 -1.442695, %v432_v3  ;;  %v448_v13 = vpop.permute.xlu1 %447 }
  0xaf   : > { %717 = vpow2.f32 %v651_v4 }
  0xb0   : > { %719 = vpow2.f32 %v652_v5  ;;  %v463_v14 = vpop.permute.xlu0 %462 }
  0xb1   : > { %v458_v17 = vpop.permute.xlu1 %457 }
  0xb4   : > { %v473_v18 = vpop.permute.xlu0 %472 }
  0xb5   : > { %v468_v19 = vpop.permute.xlu1 %467 }
  0xb9   : > { %v478_v43 = vpop.permute.xlu1 %477 }
  0xbc   : > { %v718_v6 = vpop.eup %717 }
  0xbd   : > { %v720_v7 = vpop.eup %719  ;;  %v439_v8 = vadd.f32 1.0, %v718_v6 }
  0xbe   : > { %v440_v11 = vadd.f32 1.0, %v720_v7 }
  0xbf   : > { %721 = vrcp.f32 %v439_v8 }
  0xc0   : > { %723 = vrcp.f32 %v440_v11 }
  0xcc   : > { %v722_v20 = vpop.eup %721 }
  0xcd   : > { %v724_v21 = vpop.eup %723  ;;  %v487_v24 = vadd.f32 %v722_v20, %v453_v12  ;;  %v485_v25 = vadd.f32 %v722_v20, %v448_v13  ;;  %v491_v26 = vadd.f32 %v722_v20, %v463_v14  ;;  %v489_v27 = vadd.f32 %v722_v20, %v458_v17 }
  0xce   : > { %v488_v28 = vadd.f32 %v724_v21, %v453_v12  ;;  %v486_v31 = vadd.f32 %v724_v21, %v448_v13  ;;  %v492_v32 = vadd.f32 %v724_v21, %v463_v14  ;;  %v490_v33 = vadd.f32 %v724_v21, %v458_v17 }
  0xcf   : > { %v503_v34 = vmul.f32 %v487_v24, %v841_v55  ;;  %v501_v35 = vmul.f32 %v485_v25, %v835_v53  ;;  %v507_v36 = vmul.f32 %v491_v26, %v857_v1  ;;  %v505_v37 = vmul.f32 %v489_v27, %v847_v57  ;;  %v483_v57 = vpop.permute.xlu0 %482 }
  0xd0   : > { %v504_v38 = vmul.f32 %v488_v28, %v844_v56  ;;  %v502_v39 = vmul.f32 %v486_v31, %v838_v54  ;;  %v508_v40 = vmul.f32 %v492_v32, %v860_v2  ;;  %v506_v41 = vmul.f32 %v490_v33, %v850_v58 }
  0xd1   : > { %519 = vst [vmem:[%s903_s23 + $0x10] sm:$0xff] %v503_v34  ;;  %517 = vst [vmem:[%s903_s23] sm:$0xff] %v501_v35  ;;  %v495_v53 = vadd.f32 %v722_v20, %v473_v18  ;;  %v496_v55 = vadd.f32 %v724_v21, %v473_v18  ;;  %v493_v1 = vadd.f32 %v722_v20, %v468_v19 }
  0xd2   : > { %523 = vst [vmem:[%s903_s23 + $0x30] sm:$0xff] %v507_v36  ;;  %521 = vst [vmem:[%s903_s23 + $0x20] sm:$0xff] %v505_v37  ;;  %v494_v42 = vadd.f32 %v724_v21, %v468_v19  ;;  %v499_v54 = vadd.f32 %v722_v20, %v483_v57  ;;  %v500_v56 = vadd.f32 %v724_v21, %v483_v57 }
  0xd3   : > { %520 = vst [vmem:[%s903_s23 + $0x18] sm:$0xff] %v504_v38  ;;  %518 = vst [vmem:[%s903_s23 + $0x8] sm:$0xff] %v502_v39  ;;  %v497_v58 = vadd.f32 %v722_v20, %v478_v43  ;;  %v498_v2 = vadd.f32 %v724_v21, %v478_v43  ;;  %v511_v44 = vmul.f32 %v495_v53, %v873_v15 }
  0xd4   : > { %524 = vst [vmem:[%s903_s23 + $0x38] sm:$0xff] %v508_v40  ;;  %522 = vst [vmem:[%s903_s23 + $0x28] sm:$0xff] %v506_v41  ;;  %v512_v45 = vmul.f32 %v496_v55, %v876_v16  ;;  %v509_v46 = vmul.f32 %v493_v1, %v865_v9  ;;  %v510_v47 = vmul.f32 %v494_v42, %v868_v10 }
  0xd5   : > { %v515_v48 = vmul.f32 %v499_v54, %v889_v29  ;;  %v516_v49 = vmul.f32 %v500_v56, %v892_v30  ;;  %v513_v50 = vmul.f32 %v497_v58, %v881_v22  ;;  %v514_v51 = vmul.f32 %v498_v2, %v884_v23  ;;  %527 = vst [vmem:[%s903_s23 + $0x50] sm:$0xff] %v511_v44 }
  0xd6   : > { %528 = vst [vmem:[%s903_s23 + $0x58] sm:$0xff] %v512_v45  ;;  %525 = vst [vmem:[%s903_s23 + $0x40] sm:$0xff] %v509_v46 }
  0xd7   : > { %526 = vst [vmem:[%s903_s23 + $0x48] sm:$0xff] %v510_v47  ;;  %531 = vst [vmem:[%s903_s23 + $0x70] sm:$0xff] %v515_v48 }
  0xd8   : > { %532 = vst [vmem:[%s903_s23 + $0x78] sm:$0xff] %v516_v49  ;;  %529 = vst [vmem:[%s903_s23 + $0x60] sm:$0xff] %v513_v50 }
  0xd9   : > { %530 = vst [vmem:[%s903_s23 + $0x68] sm:$0xff] %v514_v51 }
  0xda PF: > { %s16_s19 = sadd.s32 1, %s747_s19   ;;  %s951_s17 = smov %s743_s18 }
  0xdb   : > { %p13_p5 = scmp.ge.s32.totalorder %s16_s19, 4   ;;  %s952_s18 = smov %s954_s3 }
  0xdd   :  { %15 = sbr.rel (!%p13_p5) target bundleno = 3 (0x3), region = 69 }

</bundles_post_ra>
